<compile_context>
chip_gen: v5e
topology: v5e:2x2
jax: 0.10.0
libtpu: 0.0.40
codegen_flags: <defaults>
</compile_context>

<pallas_src>
import functools

import jax
import jax.numpy as jnp
from jax.experimental import pallas as pl
from jax.experimental.pallas import tpu as pltpu


# ------------------------------- kernel --------------------------------------

def _mha_kernel(q_ref, k_ref, v_ref, m_ref, wq_ref, wk_ref, wv_ref, wo_ref,
                *outs_and_scratch, n_head, d_qk, d_v, inv_temp,
                return_probs, compute_dtype):
    # Block shapes:
    #   q_ref : [1, Tq, D]      k_ref/v_ref : [1, Lk, D]
    #   m_ref : [1, 1, 1, Lk]   (1.0 = keep, 0.0 = masked/pad key)
    #   w*    : full weight matrices resident in VMEM (compute_dtype)
    #   o_ref : [1, Tq, D]      p_ref (optional) : [1, H, Tq, Lk]
    #   kproj_ref : [Lk, H*d_qk]  vproj_ref : [Lk, H*d_v]   (VMEM scratch)
    if return_probs:
        o_ref, p_ref, kproj_ref, vproj_ref = outs_and_scratch
    else:
        o_ref, kproj_ref, vproj_ref = outs_and_scratch
        p_ref = None

    # ---- K/V projections: computed once per batch (first q tile), cached ----
    @pl.when(pl.program_id(1) == 0)
    def _():
        kproj_ref[...] = jnp.dot(
            k_ref[0], wk_ref[...],
            preferred_element_type=jnp.float32).astype(compute_dtype)
        vproj_ref[...] = jnp.dot(
            v_ref[0], wv_ref[...],
            preferred_element_type=jnp.float32).astype(compute_dtype)

    # ---- Q projection for this tile; fold 1/temperature in once ----
    q = jnp.dot(q_ref[0], wq_ref[...],
                preferred_element_type=jnp.float32) * jnp.float32(inv_temp)

    k = kproj_ref[...]                      # [Lk, H*d_qk] compute_dtype
    v = vproj_ref[...]                      # [Lk, H*d_v]  compute_dtype

    # Additive mask bias, computed ONCE (not per head).
    mask = m_ref[0, 0]                      # [1, Lk]
    bias = jnp.where(mask == 0.0, jnp.float32(-1e9), jnp.float32(0.0))

    ctxs = []
    # Static unroll over heads (H is small); slices are static.
    for h in range(n_head):
        q_h = q[:, h * d_qk:(h + 1) * d_qk].astype(compute_dtype)   # [Tq, dqk]
        k_h = k[:, h * d_qk:(h + 1) * d_qk]                         # [Lk, dqk]
        v_h = v[:, h * d_v:(h + 1) * d_v]                           # [Lk, dv]

        # scores = q_h @ k_h.T without materializing the transpose.
        s = jax.lax.dot_general(
            q_h, k_h,
            dimension_numbers=(((1,), (1,)), ((), ())),
            preferred_element_type=jnp.float32)                     # [Tq, Lk]
        s = s + bias                                                # masked_fill

        # numerically-stable softmax; reciprocal on the EUP (approx).
        m = jnp.max(s, axis=-1, keepdims=True)
        e = jnp.exp(s - m)
        p = e * pl.reciprocal(jnp.sum(e, axis=-1, keepdims=True), approx=True)

        if p_ref is not None:
            p_ref[0, h] = p.astype(p_ref.dtype)

        # per-head context; output projection deferred to one dense matmul
        ctxs.append(jnp.dot(p.astype(compute_dtype), v_h,
                            preferred_element_type=jnp.float32))    # [Tq, dv]

    # One dense output projection over ALL heads: [Tq, H*d_v] x [H*d_v, D].
    ctx = jnp.concatenate(ctxs, axis=-1).astype(compute_dtype)
    out = jnp.dot(ctx, wo_ref[...], preferred_element_type=jnp.float32)

    # TODO(synk): output dropout (nn.Dropout(drop_prob)) is identity (eval mode).
    o_ref[0] = out.astype(o_ref.dtype)


# ------------------------------- wrapper --------------------------------------

def multi_head_attention(queries, keys, values, wq, wk, wv, wo, mask=None, *,
                         n_head, d_qk, d_v, block_q=None,
                         return_probs=True, probs_dtype=jnp.float32,
                         use_bf16_matmul=True):
    """Pallas MHA forward.

    Returns (output [B,Lq,D] f32, attn_probs [B,H,Lq,Lk] probs_dtype or None).
    """
    B, Lq, D = queries.shape
    Lk = keys.shape[1]
    assert values.shape[1] == Lk
    assert wq.shape == (D, n_head * d_qk)
    assert wk.shape == (D, n_head * d_qk)
    assert wv.shape == (D, n_head * d_v)
    assert wo.shape == (n_head * d_v, D)

    compute_dtype = jnp.bfloat16 if use_bf16_matmul else jnp.float32
    # bf16 at the call boundary: halves activation/weight DMA, feeds MXU bf16.
    qx = queries.astype(compute_dtype)
    kx = keys.astype(compute_dtype)
    vx = values.astype(compute_dtype)
    wqx = wq.astype(compute_dtype)
    wkx = wk.astype(compute_dtype)
    wvx = wv.astype(compute_dtype)
    wox = wo.astype(compute_dtype)

    if mask is None:
        mask4d = jnp.ones((B, 1, 1, Lk), jnp.float32)
    else:
        # Key-padding mask ([B, Lk] or [B, 1, 1, Lk]); 0.0 = masked.
        # TODO(synk): per-query (e.g. causal [B,1,Lq,Lk]) masks not wired here.
        mask4d = mask.astype(jnp.float32).reshape(B, 1, 1, Lk)

    if block_q is None:
        block_q = Lq
    assert Lq % block_q == 0
    grid = (B, Lq // block_q)

    inv_temp = 1.0 / (float(d_qk) ** 0.5)
    kernel = functools.partial(_mha_kernel, n_head=n_head, d_qk=d_qk, d_v=d_v,
                               inv_temp=inv_temp, return_probs=return_probs,
                               compute_dtype=compute_dtype)

    if return_probs:
        out_shape = (jax.ShapeDtypeStruct((B, Lq, D), jnp.float32),
                     jax.ShapeDtypeStruct((B, n_head, Lq, Lk), probs_dtype))
        out_specs = (pl.BlockSpec((1, block_q, D), lambda b, qi: (b, qi, 0)),
                     pl.BlockSpec((1, n_head, block_q, Lk),
                                  lambda b, qi: (b, 0, qi, 0)))
    else:
        out_shape = jax.ShapeDtypeStruct((B, Lq, D), jnp.float32)
        out_specs = pl.BlockSpec((1, block_q, D), lambda b, qi: (b, qi, 0))

    res = pl.pallas_call(
        kernel,
        grid=grid,
        out_shape=out_shape,
        in_specs=[
            pl.BlockSpec((1, block_q, D), lambda b, qi: (b, qi, 0)),   # queries
            pl.BlockSpec((1, Lk, D), lambda b, qi: (b, 0, 0)),         # keys
            pl.BlockSpec((1, Lk, D), lambda b, qi: (b, 0, 0)),         # values
            pl.BlockSpec((1, 1, 1, Lk), lambda b, qi: (b, 0, 0, 0)),   # mask
            pl.BlockSpec((D, n_head * d_qk), lambda b, qi: (0, 0)),    # wq
            pl.BlockSpec((D, n_head * d_qk), lambda b, qi: (0, 0)),    # wk
            pl.BlockSpec((D, n_head * d_v), lambda b, qi: (0, 0)),     # wv
            pl.BlockSpec((n_head * d_v, D), lambda b, qi: (0, 0)),     # wo
        ],
        out_specs=out_specs,
        scratch_shapes=[
            pltpu.VMEM((Lk, n_head * d_qk), compute_dtype),   # cached K proj
            pltpu.VMEM((Lk, n_head * d_v), compute_dtype),    # cached V proj
        ],
        # q-tile axis is "arbitrary" so the K/V projection cache computed at
        # qi == 0 stays valid across the remaining q tiles of the same batch.
        compiler_params=pltpu.CompilerParams(
            dimension_semantics=("parallel", "arbitrary"),
            vmem_limit_bytes=64 * 1024 * 1024),
    )(qx, kx, vx, mask4d, wqx, wkx, wvx, wox)

    if return_probs:
        return res
    return res, None


# --------------------------- pure-JAX reference --------------------------------

def reference_mha(queries, keys, values, wq, wk, wv, wo, mask, n_head, d_qk, d_v):
    B, Lq, D = queries.shape
    Lk = keys.shape[1]
    q = (queries @ wq).reshape(B, Lq, n_head, d_qk).transpose(0, 2, 1, 3)
    k = (keys @ wk).reshape(B, Lk, n_head, d_qk).transpose(0, 2, 1, 3)
    v = (values @ wv).reshape(B, Lk, n_head, d_v).transpose(0, 2, 1, 3)
    s = jnp.einsum("bhqd,bhkd->bhqk", q / (float(d_qk) ** 0.5), k)
    s = jnp.where(mask[:, None, None, :] == 0.0, -1e9, s)
    p = jax.nn.softmax(s, axis=-1)
    o = jnp.einsum("bhqk,bhkd->bhqd", p, v)
    o = o.transpose(0, 2, 1, 3).reshape(B, Lq, n_head * d_v)
    return o @ wo, p


# ---------------------------------- main ---------------------------------------

if __name__ == "__main__":
    B, Lq, Lk, D = 2, 16, 16, 32
    H, d_qk, d_v = 4, 8, 8

    key = jax.random.PRNGKey(0)
    k1, k2, k3, k4, k5, k6, k7 = jax.random.split(key, 7)
    queries = jax.random.normal(k1, (B, Lq, D), jnp.float32)
    keys = jax.random.normal(k2, (B, Lk, D), jnp.float32)
    values = jax.random.normal(k3, (B, Lk, D), jnp.float32)

    scale = 0.1
    wq = scale * jax.random.normal(k4, (D, H * d_qk), jnp.float32)
    wk = scale * jax.random.normal(k5, (D, H * d_qk), jnp.float32)
    wv = scale * jax.random.normal(k6, (D, H * d_v), jnp.float32)
    wo = scale * jax.random.normal(k7, (H * d_v, D), jnp.float32)

    # Key-padding mask: batch 0 fully valid, batch 1 has 3 trailing padded keys.
    pad_num = jnp.array([0, 3], jnp.int32)
    j = jnp.arange(Lk, dtype=jnp.int32)[None, :]
    mask = (j < (Lk - pad_num[:, None])).astype(jnp.float32)        # [B, Lk]

    # block_q=8 -> two q tiles per batch, exercising the cached-K/V-proj path.
    out, attn = multi_head_attention(queries, keys, values, wq, wk, wv, wo,
                                     mask=mask, n_head=H, d_qk=d_qk, d_v=d_v,
                                     block_q=8, return_probs=True,
                                     use_bf16_matmul=True)
    jax.block_until_ready(out)
    jax.block_until_ready(attn)
    assert out.shape == (B, Lq, D)
    assert attn.shape == (B, H, Lq, Lk)

    # Also exercise the probs-free fast path (biggest HBM-roofline win).
    out_np, attn_np = multi_head_attention(queries, keys, values, wq, wk, wv,
                                           wo, mask=mask, n_head=H, d_qk=d_qk,
                                           d_v=d_v, block_q=8,
                                           return_probs=False,
                                           use_bf16_matmul=True)
    jax.block_until_ready(out_np)
    assert attn_np is None
    assert out_np.shape == (B, Lq, D)

    ref_out, ref_attn = reference_mha(queries, keys, values, wq, wk, wv, wo,
                                      mask, H, d_qk, d_v)
    # bf16 MXU operands + approx reciprocal on the softmax denominator
    # -> a few e-3 absolute deviation from the f32 reference.
    err_o = float(jnp.max(jnp.abs(out - ref_out)))
    err_a = float(jnp.max(jnp.abs(attn - ref_attn)))
    err_np = float(jnp.max(jnp.abs(out_np - ref_out)))
    assert err_o < 5e-2, f"output mismatch: {err_o}"
    assert err_a < 3e-2, f"attn-probs mismatch: {err_a}"
    assert err_np < 5e-2, f"no-probs output mismatch: {err_np}"
    assert float(jnp.max(jnp.abs(out_np - out))) < 1e-6

    print("KERNEL_OK")
</pallas_src>

<mosaic_0001>
module attributes {stable_mosaic.version = 11 : i64} {
  func.func @_mha_kernel(%arg0: i32, %arg1: i32, %arg2: memref<1x8x32xbf16, #tpu.memory_space<vmem>>, %arg3: memref<1x16x32xbf16, #tpu.memory_space<vmem>>, %arg4: memref<1x16x32xbf16, #tpu.memory_space<vmem>>, %arg5: memref<1x1x1x16xf32, #tpu.memory_space<vmem>>, %arg6: memref<32x32xbf16, #tpu.memory_space<vmem>>, %arg7: memref<32x32xbf16, #tpu.memory_space<vmem>>, %arg8: memref<32x32xbf16, #tpu.memory_space<vmem>>, %arg9: memref<32x32xbf16, #tpu.memory_space<vmem>>, %arg10: memref<1x8x32xf32, #tpu.memory_space<vmem>>, %arg11: memref<1x4x8x16xf32, #tpu.memory_space<vmem>>, %arg12: memref<16x32xbf16, #tpu.memory_space<vmem>>, %arg13: memref<16x32xbf16, #tpu.memory_space<vmem>>) attributes {dimension_semantics = [#tpu.dimension_semantics<parallel>, #tpu.dimension_semantics<arbitrary>], iteration_bounds = array<i64: 2, 2>, scalar_prefetch = 0 : i64, scratch_operands = 2 : i64, tpu.core_type = #tpu.core_type<tc>, window_params = [{transform_indices = @transform_0, window_bounds = array<i64: 1, 8, 32>}, {transform_indices = @transform_1, window_bounds = array<i64: 1, 16, 32>}, {transform_indices = @transform_2, window_bounds = array<i64: 1, 16, 32>}, {transform_indices = @transform_3, window_bounds = array<i64: 1, 1, 1, 16>}, {pipeline_mode = #tpu.pipeline_mode<synchronous>, transform_indices = @transform_4, window_bounds = array<i64: 32, 32>}, {pipeline_mode = #tpu.pipeline_mode<synchronous>, transform_indices = @transform_5, window_bounds = array<i64: 32, 32>}, {pipeline_mode = #tpu.pipeline_mode<synchronous>, transform_indices = @transform_6, window_bounds = array<i64: 32, 32>}, {pipeline_mode = #tpu.pipeline_mode<synchronous>, transform_indices = @transform_7, window_bounds = array<i64: 32, 32>}, {transform_indices = @transform_8, window_bounds = array<i64: 1, 8, 32>}, {transform_indices = @transform_9, window_bounds = array<i64: 1, 4, 8, 16>}]} {
    %c0_i32 = arith.constant 0 : i32
    %0 = arith.cmpi eq, %arg1, %c0_i32 : i32
    %1 = arith.extui %0 : i1 to i32
    %c0_i32_0 = arith.constant 0 : i32
    %2 = arith.cmpi ne, %1, %c0_i32_0 : i32
    scf.if %2 {
      %c0_52 = arith.constant 0 : index
      %c0_53 = arith.constant 0 : index
      %c0_54 = arith.constant 0 : index
      %113 = vector.load %arg3[%c0_52, %c0_53, %c0_54] : memref<1x16x32xbf16, #tpu.memory_space<vmem>>, vector<1x16x32xbf16>
      %114 = vector.shape_cast %113 : vector<1x16x32xbf16> to vector<16x32xbf16>
      %c0_55 = arith.constant 0 : index
      %c0_56 = arith.constant 0 : index
      %115 = vector.load %arg7[%c0_55, %c0_56] : memref<32x32xbf16, #tpu.memory_space<vmem>>, vector<32x32xbf16>
      %cst_57 = arith.constant dense<0.000000e+00> : vector<16x32xf32>
      %116 = tpu.matmul %114, %115, %cst_57 {dimension_numbers = #tpu.dot_dimension_numbers<[1], [0], [0], [1], [0, 0, 1, 1], [], []>} : vector<16x32xbf16>, vector<32x32xbf16>, vector<16x32xf32> -> vector<16x32xf32>
      %117 = arith.truncf %116 : vector<16x32xf32> to vector<16x32xbf16>
      %c0_58 = arith.constant 0 : index
      %c0_59 = arith.constant 0 : index
      %118 = vector.load %arg12[%c0_58, %c0_59] : memref<16x32xbf16, #tpu.memory_space<vmem>>, vector<16x32xbf16>
      tpu.vector_store %arg12[%c0_58, %c0_59], %117 {strides = array<i32>} : memref<16x32xbf16, #tpu.memory_space<vmem>>, vector<16x32xbf16>,
      %c0_60 = arith.constant 0 : index
      %c0_61 = arith.constant 0 : index
      %c0_62 = arith.constant 0 : index
      %119 = vector.load %arg4[%c0_60, %c0_61, %c0_62] : memref<1x16x32xbf16, #tpu.memory_space<vmem>>, vector<1x16x32xbf16>
      %120 = vector.shape_cast %119 : vector<1x16x32xbf16> to vector<16x32xbf16>
      %c0_63 = arith.constant 0 : index
      %c0_64 = arith.constant 0 : index
      %121 = vector.load %arg8[%c0_63, %c0_64] : memref<32x32xbf16, #tpu.memory_space<vmem>>, vector<32x32xbf16>
      %cst_65 = arith.constant dense<0.000000e+00> : vector<16x32xf32>
      %122 = tpu.matmul %120, %121, %cst_65 {dimension_numbers = #tpu.dot_dimension_numbers<[1], [0], [0], [1], [0, 0, 1, 1], [], []>} : vector<16x32xbf16>, vector<32x32xbf16>, vector<16x32xf32> -> vector<16x32xf32>
      %123 = arith.truncf %122 : vector<16x32xf32> to vector<16x32xbf16>
      %c0_66 = arith.constant 0 : index
      %c0_67 = arith.constant 0 : index
      %124 = vector.load %arg13[%c0_66, %c0_67] : memref<16x32xbf16, #tpu.memory_space<vmem>>, vector<16x32xbf16>
      tpu.vector_store %arg13[%c0_66, %c0_67], %123 {strides = array<i32>} : memref<16x32xbf16, #tpu.memory_space<vmem>>, vector<16x32xbf16>,
    } else {
    }
    %c0 = arith.constant 0 : index
    %c0_1 = arith.constant 0 : index
    %c0_2 = arith.constant 0 : index
    %3 = vector.load %arg2[%c0, %c0_1, %c0_2] : memref<1x8x32xbf16, #tpu.memory_space<vmem>>, vector<1x8x32xbf16>
    %4 = vector.shape_cast %3 : vector<1x8x32xbf16> to vector<8x32xbf16>
    %c0_3 = arith.constant 0 : index
    %c0_4 = arith.constant 0 : index
    %5 = vector.load %arg6[%c0_3, %c0_4] : memref<32x32xbf16, #tpu.memory_space<vmem>>, vector<32x32xbf16>
    %cst = arith.constant dense<0.000000e+00> : vector<8x32xf32>
    %6 = tpu.matmul %4, %5, %cst {dimension_numbers = #tpu.dot_dimension_numbers<[1], [0], [0], [1], [0, 0, 1, 1], [], []>} : vector<8x32xbf16>, vector<32x32xbf16>, vector<8x32xf32> -> vector<8x32xf32>
    %cst_5 = arith.constant 0.353553385 : f32
    %7 = vector.broadcast %cst_5 : f32 to vector<8x32xf32>
    %8 = arith.mulf %6, %7 : vector<8x32xf32>
    %c0_6 = arith.constant 0 : index
    %c0_7 = arith.constant 0 : index
    %9 = vector.load %arg12[%c0_6, %c0_7] : memref<16x32xbf16, #tpu.memory_space<vmem>>, vector<16x32xbf16>
    %c0_8 = arith.constant 0 : index
    %c0_9 = arith.constant 0 : index
    %10 = vector.load %arg13[%c0_8, %c0_9] : memref<16x32xbf16, #tpu.memory_space<vmem>>, vector<16x32xbf16>
    %c0_10 = arith.constant 0 : index
    %c0_11 = arith.constant 0 : index
    %c0_12 = arith.constant 0 : index
    %c0_13 = arith.constant 0 : index
    %11 = vector.load %arg5[%c0_10, %c0_11, %c0_12, %c0_13] : memref<1x1x1x16xf32, #tpu.memory_space<vmem>>, vector<1x1x1x16xf32>
    %12 = vector.shape_cast %11 : vector<1x1x1x16xf32> to vector<1x16xf32>
    %cst_14 = arith.constant 0.000000e+00 : f32
    %13 = vector.broadcast %cst_14 : f32 to vector<1x16xf32>
    %14 = arith.cmpf oeq, %12, %13 : vector<1x16xf32>
    %cst_15 = arith.constant -1.000000e+09 : f32
    %cst_16 = arith.constant 0.000000e+00 : f32
    %15 = vector.broadcast %cst_15 : f32 to vector<1x16xf32>
    %16 = vector.broadcast %cst_16 : f32 to vector<1x16xf32>
    %17 = arith.select %14, %15, %16 : vector<1x16xi1>, vector<1x16xf32>
    %18 = vector.extract_strided_slice %8 {offsets = [0, 0], sizes = [8, 8], strides = [1, 1]} : vector<8x32xf32> to vector<8x8xf32>
    %19 = arith.truncf %18 : vector<8x8xf32> to vector<8x8xbf16>
    %20 = vector.extract_strided_slice %9 {offsets = [0, 0], sizes = [16, 8], strides = [1, 1]} : vector<16x32xbf16> to vector<16x8xbf16>
    %21 = vector.extract_strided_slice %10 {offsets = [0, 0], sizes = [16, 8], strides = [1, 1]} : vector<16x32xbf16> to vector<16x8xbf16>
    %cst_17 = arith.constant dense<0.000000e+00> : vector<8x16xf32>
    %22 = tpu.matmul %19, %20, %cst_17 {dimension_numbers = #tpu.dot_dimension_numbers<[1], [1], [0], [0], [0, 0, 1, 0], [], []>} : vector<8x8xbf16>, vector<16x8xbf16>, vector<8x16xf32> -> vector<8x16xf32>
    %23 = vector.broadcast %17 : vector<1x16xf32> to vector<8x16xf32>
    %24 = arith.addf %22, %23 : vector<8x16xf32>
    %cst_18 = arith.constant dense<0xFF800000> : vector<8xf32>
    %25 = vector.multi_reduction <maximumf>, %24, %cst_18 [1] : vector<8x16xf32> to vector<8xf32>
    %26 = vector.shape_cast %25 : vector<8xf32> to vector<8x1xf32>
    %27 = vector.broadcast %26 : vector<8x1xf32> to vector<8x16xf32>
    %28 = arith.subf %24, %27 : vector<8x16xf32>
    %29 = math.exp %28 : vector<8x16xf32>
    %cst_19 = arith.constant dense<0.000000e+00> : vector<8xf32>
    %30 = vector.multi_reduction <add>, %29, %cst_19 [1] : vector<8x16xf32> to vector<8xf32>
    %31 = vector.shape_cast %30 : vector<8xf32> to vector<8x1xf32>
    %32 = tpu.reciprocal %31 {approx = true} : vector<8x1xf32> -> vector<8x1xf32>
    %33 = vector.broadcast %32 : vector<8x1xf32> to vector<8x16xf32>
    %34 = arith.mulf %29, %33 : vector<8x16xf32>
    %c0_20 = arith.constant 0 : index
    %c0_21 = arith.constant 0 : index
    %c0_22 = arith.constant 0 : index
    %c0_23 = arith.constant 0 : index
    %35 = vector.load %arg11[%c0_20, %c0_21, %c0_22, %c0_23] : memref<1x4x8x16xf32, #tpu.memory_space<vmem>>, vector<1x1x8x16xf32>
    %36 = vector.shape_cast %35 : vector<1x1x8x16xf32> to vector<8x16xf32>
    %37 = vector.shape_cast %34 : vector<8x16xf32> to vector<1x1x8x16xf32>
    tpu.vector_store %arg11[%c0_20, %c0_21, %c0_22, %c0_23], %37 {strides = array<i32>} : memref<1x4x8x16xf32, #tpu.memory_space<vmem>>, vector<1x1x8x16xf32>,
    %38 = arith.truncf %34 : vector<8x16xf32> to vector<8x16xbf16>
    %cst_24 = arith.constant dense<0.000000e+00> : vector<8x8xf32>
    %39 = tpu.matmul %38, %21, %cst_24 {dimension_numbers = #tpu.dot_dimension_numbers<[1], [0], [0], [1], [0, 0, 1, 1], [], []>} : vector<8x16xbf16>, vector<16x8xbf16>, vector<8x8xf32> -> vector<8x8xf32>
    %40 = vector.extract_strided_slice %8 {offsets = [0, 8], sizes = [8, 8], strides = [1, 1]} : vector<8x32xf32> to vector<8x8xf32>
    %41 = arith.truncf %40 : vector<8x8xf32> to vector<8x8xbf16>
    %42 = vector.extract_strided_slice %9 {offsets = [0, 8], sizes = [16, 8], strides = [1, 1]} : vector<16x32xbf16> to vector<16x8xbf16>
    %43 = vector.extract_strided_slice %10 {offsets = [0, 8], sizes = [16, 8], strides = [1, 1]} : vector<16x32xbf16> to vector<16x8xbf16>
    %cst_25 = arith.constant dense<0.000000e+00> : vector<8x16xf32>
    %44 = tpu.matmul %41, %42, %cst_25 {dimension_numbers = #tpu.dot_dimension_numbers<[1], [1], [0], [0], [0, 0, 1, 0], [], []>} : vector<8x8xbf16>, vector<16x8xbf16>, vector<8x16xf32> -> vector<8x16xf32>
    %45 = vector.broadcast %17 : vector<1x16xf32> to vector<8x16xf32>
    %46 = arith.addf %44, %45 : vector<8x16xf32>
    %cst_26 = arith.constant dense<0xFF800000> : vector<8xf32>
    %47 = vector.multi_reduction <maximumf>, %46, %cst_26 [1] : vector<8x16xf32> to vector<8xf32>
    %48 = vector.shape_cast %47 : vector<8xf32> to vector<8x1xf32>
    %49 = vector.broadcast %48 : vector<8x1xf32> to vector<8x16xf32>
    %50 = arith.subf %46, %49 : vector<8x16xf32>
    %51 = math.exp %50 : vector<8x16xf32>
    %cst_27 = arith.constant dense<0.000000e+00> : vector<8xf32>
    %52 = vector.multi_reduction <add>, %51, %cst_27 [1] : vector<8x16xf32> to vector<8xf32>
    %53 = vector.shape_cast %52 : vector<8xf32> to vector<8x1xf32>
    %54 = tpu.reciprocal %53 {approx = true} : vector<8x1xf32> -> vector<8x1xf32>
    %55 = vector.broadcast %54 : vector<8x1xf32> to vector<8x16xf32>
    %56 = arith.mulf %51, %55 : vector<8x16xf32>
    %c0_28 = arith.constant 0 : index
    %c1 = arith.constant 1 : index
    %c0_29 = arith.constant 0 : index
    %c0_30 = arith.constant 0 : index
    %57 = vector.load %arg11[%c0_28, %c1, %c0_29, %c0_30] : memref<1x4x8x16xf32, #tpu.memory_space<vmem>>, vector<1x1x8x16xf32>
    %58 = vector.shape_cast %57 : vector<1x1x8x16xf32> to vector<8x16xf32>
    %59 = vector.shape_cast %56 : vector<8x16xf32> to vector<1x1x8x16xf32>
    tpu.vector_store %arg11[%c0_28, %c1, %c0_29, %c0_30], %59 {strides = array<i32>} : memref<1x4x8x16xf32, #tpu.memory_space<vmem>>, vector<1x1x8x16xf32>,
    %60 = arith.truncf %56 : vector<8x16xf32> to vector<8x16xbf16>
    %cst_31 = arith.constant dense<0.000000e+00> : vector<8x8xf32>
    %61 = tpu.matmul %60, %43, %cst_31 {dimension_numbers = #tpu.dot_dimension_numbers<[1], [0], [0], [1], [0, 0, 1, 1], [], []>} : vector<8x16xbf16>, vector<16x8xbf16>, vector<8x8xf32> -> vector<8x8xf32>
    %62 = vector.extract_strided_slice %8 {offsets = [0, 16], sizes = [8, 8], strides = [1, 1]} : vector<8x32xf32> to vector<8x8xf32>
    %63 = arith.truncf %62 : vector<8x8xf32> to vector<8x8xbf16>
    %64 = vector.extract_strided_slice %9 {offsets = [0, 16], sizes = [16, 8], strides = [1, 1]} : vector<16x32xbf16> to vector<16x8xbf16>
    %65 = vector.extract_strided_slice %10 {offsets = [0, 16], sizes = [16, 8], strides = [1, 1]} : vector<16x32xbf16> to vector<16x8xbf16>
    %cst_32 = arith.constant dense<0.000000e+00> : vector<8x16xf32>
    %66 = tpu.matmul %63, %64, %cst_32 {dimension_numbers = #tpu.dot_dimension_numbers<[1], [1], [0], [0], [0, 0, 1, 0], [], []>} : vector<8x8xbf16>, vector<16x8xbf16>, vector<8x16xf32> -> vector<8x16xf32>
    %67 = vector.broadcast %17 : vector<1x16xf32> to vector<8x16xf32>
    %68 = arith.addf %66, %67 : vector<8x16xf32>
    %cst_33 = arith.constant dense<0xFF800000> : vector<8xf32>
    %69 = vector.multi_reduction <maximumf>, %68, %cst_33 [1] : vector<8x16xf32> to vector<8xf32>
    %70 = vector.shape_cast %69 : vector<8xf32> to vector<8x1xf32>
    %71 = vector.broadcast %70 : vector<8x1xf32> to vector<8x16xf32>
    %72 = arith.subf %68, %71 : vector<8x16xf32>
    %73 = math.exp %72 : vector<8x16xf32>
    %cst_34 = arith.constant dense<0.000000e+00> : vector<8xf32>
    %74 = vector.multi_reduction <add>, %73, %cst_34 [1] : vector<8x16xf32> to vector<8xf32>
    %75 = vector.shape_cast %74 : vector<8xf32> to vector<8x1xf32>
    %76 = tpu.reciprocal %75 {approx = true} : vector<8x1xf32> -> vector<8x1xf32>
    %77 = vector.broadcast %76 : vector<8x1xf32> to vector<8x16xf32>
    %78 = arith.mulf %73, %77 : vector<8x16xf32>
    %c0_35 = arith.constant 0 : index
    %c2 = arith.constant 2 : index
    %c0_36 = arith.constant 0 : index
    %c0_37 = arith.constant 0 : index
    %79 = vector.load %arg11[%c0_35, %c2, %c0_36, %c0_37] : memref<1x4x8x16xf32, #tpu.memory_space<vmem>>, vector<1x1x8x16xf32>
    %80 = vector.shape_cast %79 : vector<1x1x8x16xf32> to vector<8x16xf32>
    %81 = vector.shape_cast %78 : vector<8x16xf32> to vector<1x1x8x16xf32>
    tpu.vector_store %arg11[%c0_35, %c2, %c0_36, %c0_37], %81 {strides = array<i32>} : memref<1x4x8x16xf32, #tpu.memory_space<vmem>>, vector<1x1x8x16xf32>,
    %82 = arith.truncf %78 : vector<8x16xf32> to vector<8x16xbf16>
    %cst_38 = arith.constant dense<0.000000e+00> : vector<8x8xf32>
    %83 = tpu.matmul %82, %65, %cst_38 {dimension_numbers = #tpu.dot_dimension_numbers<[1], [0], [0], [1], [0, 0, 1, 1], [], []>} : vector<8x16xbf16>, vector<16x8xbf16>, vector<8x8xf32> -> vector<8x8xf32>
    %84 = vector.extract_strided_slice %8 {offsets = [0, 24], sizes = [8, 8], strides = [1, 1]} : vector<8x32xf32> to vector<8x8xf32>
    %85 = arith.truncf %84 : vector<8x8xf32> to vector<8x8xbf16>
    %86 = vector.extract_strided_slice %9 {offsets = [0, 24], sizes = [16, 8], strides = [1, 1]} : vector<16x32xbf16> to vector<16x8xbf16>
    %87 = vector.extract_strided_slice %10 {offsets = [0, 24], sizes = [16, 8], strides = [1, 1]} : vector<16x32xbf16> to vector<16x8xbf16>
    %cst_39 = arith.constant dense<0.000000e+00> : vector<8x16xf32>
    %88 = tpu.matmul %85, %86, %cst_39 {dimension_numbers = #tpu.dot_dimension_numbers<[1], [1], [0], [0], [0, 0, 1, 0], [], []>} : vector<8x8xbf16>, vector<16x8xbf16>, vector<8x16xf32> -> vector<8x16xf32>
    %89 = vector.broadcast %17 : vector<1x16xf32> to vector<8x16xf32>
    %90 = arith.addf %88, %89 : vector<8x16xf32>
    %cst_40 = arith.constant dense<0xFF800000> : vector<8xf32>
    %91 = vector.multi_reduction <maximumf>, %90, %cst_40 [1] : vector<8x16xf32> to vector<8xf32>
    %92 = vector.shape_cast %91 : vector<8xf32> to vector<8x1xf32>
    %93 = vector.broadcast %92 : vector<8x1xf32> to vector<8x16xf32>
    %94 = arith.subf %90, %93 : vector<8x16xf32>
    %95 = math.exp %94 : vector<8x16xf32>
    %cst_41 = arith.constant dense<0.000000e+00> : vector<8xf32>
    %96 = vector.multi_reduction <add>, %95, %cst_41 [1] : vector<8x16xf32> to vector<8xf32>
    %97 = vector.shape_cast %96 : vector<8xf32> to vector<8x1xf32>
    %98 = tpu.reciprocal %97 {approx = true} : vector<8x1xf32> -> vector<8x1xf32>
    %99 = vector.broadcast %98 : vector<8x1xf32> to vector<8x16xf32>
    %100 = arith.mulf %95, %99 : vector<8x16xf32>
    %c0_42 = arith.constant 0 : index
    %c3 = arith.constant 3 : index
    %c0_43 = arith.constant 0 : index
    %c0_44 = arith.constant 0 : index
    %101 = vector.load %arg11[%c0_42, %c3, %c0_43, %c0_44] : memref<1x4x8x16xf32, #tpu.memory_space<vmem>>, vector<1x1x8x16xf32>
    %102 = vector.shape_cast %101 : vector<1x1x8x16xf32> to vector<8x16xf32>
    %103 = vector.shape_cast %100 : vector<8x16xf32> to vector<1x1x8x16xf32>
    tpu.vector_store %arg11[%c0_42, %c3, %c0_43, %c0_44], %103 {strides = array<i32>} : memref<1x4x8x16xf32, #tpu.memory_space<vmem>>, vector<1x1x8x16xf32>,
    %104 = arith.truncf %100 : vector<8x16xf32> to vector<8x16xbf16>
    %cst_45 = arith.constant dense<0.000000e+00> : vector<8x8xf32>
    %105 = tpu.matmul %104, %87, %cst_45 {dimension_numbers = #tpu.dot_dimension_numbers<[1], [0], [0], [1], [0, 0, 1, 1], [], []>} : vector<8x16xbf16>, vector<16x8xbf16>, vector<8x8xf32> -> vector<8x8xf32>
    %106 = tpu.concatenate %39, %61, %83, %105 in 1 : vector<8x8xf32>, vector<8x8xf32>, vector<8x8xf32>, vector<8x8xf32> -> vector<8x32xf32>
    %107 = arith.truncf %106 : vector<8x32xf32> to vector<8x32xbf16>
    %c0_46 = arith.constant 0 : index
    %c0_47 = arith.constant 0 : index
    %108 = vector.load %arg9[%c0_46, %c0_47] : memref<32x32xbf16, #tpu.memory_space<vmem>>, vector<32x32xbf16>
    %cst_48 = arith.constant dense<0.000000e+00> : vector<8x32xf32>
    %109 = tpu.matmul %107, %108, %cst_48 {dimension_numbers = #tpu.dot_dimension_numbers<[1], [0], [0], [1], [0, 0, 1, 1], [], []>} : vector<8x32xbf16>, vector<32x32xbf16>, vector<8x32xf32> -> vector<8x32xf32>
    %c0_49 = arith.constant 0 : index
    %c0_50 = arith.constant 0 : index
    %c0_51 = arith.constant 0 : index
    %110 = vector.load %arg10[%c0_49, %c0_50, %c0_51] : memref<1x8x32xf32, #tpu.memory_space<vmem>>, vector<1x8x32xf32>
    %111 = vector.shape_cast %110 : vector<1x8x32xf32> to vector<8x32xf32>
    %112 = vector.shape_cast %109 : vector<8x32xf32> to vector<1x8x32xf32>
    tpu.vector_store %arg10[%c0_49, %c0_50, %c0_51], %112 {strides = array<i32>} : memref<1x8x32xf32, #tpu.memory_space<vmem>>, vector<1x8x32xf32>,
    return
  }
  func.func @transform_0(%arg0: i32, %arg1: i32) -> (i32, i32, i32) {
    %c0_i32 = arith.constant 0 : i32
    %c0_i32_0 = arith.constant 0 : i32
    return %arg0, %arg1, %c0_i32 : i32, i32, i32
  }
  func.func @transform_1(%arg0: i32, %arg1: i32) -> (i32, i32, i32) {
    %c0_i32 = arith.constant 0 : i32
    %c0_i32_0 = arith.constant 0 : i32
    %c0_i32_1 = arith.constant 0 : i32
    return %arg0, %c0_i32, %c0_i32_0 : i32, i32, i32
  }
  func.func @transform_2(%arg0: i32, %arg1: i32) -> (i32, i32, i32) {
    %c0_i32 = arith.constant 0 : i32
    %c0_i32_0 = arith.constant 0 : i32
    %c0_i32_1 = arith.constant 0 : i32
    return %arg0, %c0_i32, %c0_i32_0 : i32, i32, i32
  }
  func.func @transform_3(%arg0: i32, %arg1: i32) -> (i32, i32, i32, i32) {
    %c0_i32 = arith.constant 0 : i32
    %c0_i32_0 = arith.constant 0 : i32
    %c0_i32_1 = arith.constant 0 : i32
    %c0_i32_2 = arith.constant 0 : i32
    return %arg0, %c0_i32, %c0_i32_0, %c0_i32_1 : i32, i32, i32, i32
  }
  func.func @transform_4(%arg0: i32, %arg1: i32) -> (i32, i32) {
    %c0_i32 = arith.constant 0 : i32
    %c0_i32_0 = arith.constant 0 : i32
    %c0_i32_1 = arith.constant 0 : i32
    return %c0_i32, %c0_i32_0 : i32, i32
  }
  func.func @transform_5(%arg0: i32, %arg1: i32) -> (i32, i32) {
    %c0_i32 = arith.constant 0 : i32
    %c0_i32_0 = arith.constant 0 : i32
    %c0_i32_1 = arith.constant 0 : i32
    return %c0_i32, %c0_i32_0 : i32, i32
  }
  func.func @transform_6(%arg0: i32, %arg1: i32) -> (i32, i32) {
    %c0_i32 = arith.constant 0 : i32
    %c0_i32_0 = arith.constant 0 : i32
    %c0_i32_1 = arith.constant 0 : i32
    return %c0_i32, %c0_i32_0 : i32, i32
  }
  func.func @transform_7(%arg0: i32, %arg1: i32) -> (i32, i32) {
    %c0_i32 = arith.constant 0 : i32
    %c0_i32_0 = arith.constant 0 : i32
    %c0_i32_1 = arith.constant 0 : i32
    return %c0_i32, %c0_i32_0 : i32, i32
  }
  func.func @transform_8(%arg0: i32, %arg1: i32) -> (i32, i32, i32) {
    %c0_i32 = arith.constant 0 : i32
    %c0_i32_0 = arith.constant 0 : i32
    return %arg0, %arg1, %c0_i32 : i32, i32, i32
  }
  func.func @transform_9(%arg0: i32, %arg1: i32) -> (i32, i32, i32, i32) {
    %c0_i32 = arith.constant 0 : i32
    %c0_i32_0 = arith.constant 0 : i32
    %c0_i32_1 = arith.constant 0 : i32
    return %arg0, %c0_i32, %arg1, %c0_i32_0 : i32, i32, i32, i32
  }
}

</mosaic_0001>

<bundles_post_ra>
// kernel: tpu_custom_call.1
= control target key start
LH: loop header
LB: loop body
LE: loop exit
PB: predicated region body
PF: predicated region fallthrough
CT: control target
= control target key end

     0   :  { %s2330_s0 = inlined_call_operand.hbm [shape: bf16[2,16,32], index: 0, kind: input, shape index: {}]   ;;  %s2331_s1 = inlined_call_operand.hbm [shape: bf16[2,16,32], index: 1, kind: input, shape index: {}]   ;;  %s2332_s2 = inlined_call_operand.hbm [shape: bf16[2,16,32], index: 2, kind: input, shape index: {}]   ;;  %s2333_s3 = inlined_call_operand.vmem [shape: f32[2,1,1,16], index: 3, kind: input, shape index: {}]   ;;  %s2334_s4 = inlined_call_operand.hbm [shape: bf16[32,32], index: 4, kind: input, shape index: {}]   ;;  %s2335_s5 = inlined_call_operand.hbm [shape: bf16[32,32], index: 5, kind: input, shape index: {}]   ;;  %s2336_s6 = inlined_call_operand.hbm [shape: bf16[32,32], index: 6, kind: input, shape index: {}]   ;;  %s2337_s7 = inlined_call_operand.hbm [shape: bf16[32,32], index: 7, kind: input, shape index: {}]   ;;  %s2338_s8 = inlined_call_operand.hbm [shape: f32[2,16,32], index: 8, kind: output, shape index: {0}]   ;;  %s2339_s9 = inlined_call_operand.hbm [shape: f32[2,4,16,16], index: 9, kind: output, shape index: {1}]  }
   0x1   :  { %2362 = sst [smem:[#allocation35_spill]] %s2330_s0 }
   0x2   :  { %2363 = sst [smem:[#allocation36_spill]] %s2331_s1 }
   0x3   :  { %2364 = sst [smem:[#allocation37_spill]] %s2332_s2 }
   0x4   :  { %2365 = sst [smem:[#allocation38_spill]] %s2333_s3 }
   0x5   :  { %2366 = sst [smem:[#allocation39_spill]] %s2334_s4 }
   0x6   :  { %2367 = sst [smem:[#allocation40_spill]] %s2335_s5 }
   0x7   :  { %2368 = sst [smem:[#allocation41_spill]] %s2336_s6 }
   0x8   :  { %2369 = sst [smem:[#allocation42_spill]] %s2337_s7 }
   0x9   :  { %2370 = sst [smem:[#allocation43_spill]] %s2338_s8 }
   0xa   :  { %2371 = sst [smem:[#allocation44_spill]] %s2339_s9 }
   0xb   :  { %15 = vsyncpa [#allocation5], 0 }
   0xc   :  { %17 = vsyncpa [#allocation5 + $0x1], 0 }
   0xd   :  { %18 = vsyncpa [#allocation8], 0 }
   0xe   :  { %20 = vsyncpa [#allocation8 + $0x1], 0 }
   0xf   :  { %21 = vsyncpa [#allocation11], 0 }
  0x10   :  { %22 = vsyncpa [#allocation14], 0 }
  0x11   :  { %23 = vsyncpa [#allocation6], 0 }
  0x12   :  { %25 = vsyncpa [#allocation6 + $0x1], 0 }
  0x13   :  { %26 = vsyncpa [#allocation18], 0 }
  0x14   :  { %28 = vsyncpa [#allocation18 + $0x1], 0  ;;  %s1955_s30 = smov 0   ;;  %s1957_s10 = smov 0  }
  0x15   :  { %s1959_s11 = smov 0   ;;  %s1961_s12 = smov 0  }
  0x16   :  { %s1963_s13 = smov 0   ;;  %s1965_s14 = smov 0  }
  0x17   :  { %s1967_s15 = smov 0   ;;  %s1969_s16 = smov 0  }
  0x18   :  { %s1971_s17 = smov 0   ;;  %s1973_s18 = smov 0  }
  0x19   :  { %s1975_s19 = smov 0  }
  0x1a LB: > { %2372 = sst [smem:[#allocation25_spill]] %s1852_s10  ;;  %s2011_s20 = sadd.s32 4294967295, %s1888_s19   ;;  %s1888_s19 = sphi %s1975_s19, %s34_s19   ;;  %s1884_s18 = sphi %s1973_s18, %s2426_s18   ;;  %s1880_s17 = sphi %s1971_s17, %s2425_s17   ;;  %s1876_s16 = sphi %s1969_s16, %s2424_s16   ;;  %s1872_s15 = sphi %s1967_s15, %s2423_s15   ;;  %s1868_s14 = sphi %s1965_s14, %s2422_s14   ;;  %s1864_s13 = sphi %s1963_s13, %s2421_s13   ;;  %s1860_s12 = sphi %s1961_s12, %s2420_s12   ;;  %s1856_s11 = sphi %s1959_s11, %s2419_s11   ;;  %s1852_s10 = sphi %s1957_s10, %s2418_s10   ;;  %s1848_s30 = sphi %s1955_s30, %s2415_s30  }
  0x1b   : > { %2373 = sst [smem:[#allocation26_spill]] %s1860_s12  ;;  %p1216_p0 = scmp.ge.s32.totalorder %s1888_s19, 1 }
  0x1c   : > { %2374 = sst [smem:[#allocation27_spill]] %s1872_s15  ;;  %p69_p1 = scmp.eq.s32.totalorder %s2011_s20, 0 }
  0x1d   : > { %2375 = sst [smem:[#allocation28_spill]] %s1876_s16  ;;  %p297_p2 = scmp.lt.s32.totalorder %s1888_s19, 5 }
  0x1e   : > { %2376 = sst [smem:[#allocation29_spill]] %s2011_s20  ;;  %s1890_s25 = smov [#allocation10]  }
  0x1f   : > { %s2377_s4 = sld [smem:[#allocation39_spill]]  ;;  %p2019_p3 = pnand %p1216_p0, %p297_p2 }
  0x20   : > { %s310_s26 = sshll.u32 %s1890_s25, 4  ;;  %s2380_s6 = sld [smem:[#allocation41_spill]]  ;;  %s311_s26 = int_to_ptr.vmem [resolvable:$true] %s310_s26 }
  0x21   : > { %p1353_p4 = pneg %p2019_p3  ;;  %s2343_s22 = smov 64  }
  0x22   : > { %s2345_s25 = smov 4   ;;  %p63_p6 = scmp.eq.s32.totalorder %s1888_s19, 0 }
  0x23   : > { %p2027_p5 = pnand %p1353_p4, %p69_p1  ;;  %p88_p7 = scmp.ne.s32.totalorder %s1856_s11, %s1852_s10 }
  0x24   : > { %p94_p8 = scmp.ne.s32.totalorder %s1852_s10, %s1848_s30  ;;  %p2351_p9 = scmp.lt.s32.totalorder %s1888_s19, 4 }
  0x25   : > { %s308_s23 = sshll.u32 %s2377_s4, 4  ;;  %s1893_s4 = smov [#allocation13]   ;;  %s309_s23 = int_to_ptr.hbm [resolvable:$true] %s308_s23 }
  0x26   : > { %s336_s21 = sshll.u32 %s2380_s6, 4  ;;  %s338_s8 = sshll.u32 %s1893_s4, 4  ;;  %s337_s21 = int_to_ptr.hbm [resolvable:$true] %s336_s21  ;;  %s339_s8 = int_to_ptr.vmem [resolvable:$true] %s338_s8 }
  0x27   : > { %1356 = dma.hbm_to_vmem [thread:$0]  (!%p2027_p5), %s309_s23, 256, %s311_s26, [#allocation11], %s2343_s22, %s2343_s22, %s2345_s25  }
  0x28   : > { %1362 = dma.hbm_to_vmem [thread:$0]  (!%p2027_p5), %s337_s21, 256, %s339_s8, [#allocation14], %s2343_s22, %s2343_s22, %s2345_s25  }
  0x29   : > { %p2053_p10 = por %p94_p8, %p69_p1  ;;  %s387_s23 = sand.u32 1, %s1888_s19  }
  0x2a   : > { %p90_p11 = por %p88_p7, %p63_p6  ;;  %s389_s4 = sand.u32 1, %s1856_s11  }
  0x2b   : > { %s2381_s29 = scalar_select %p2053_p10, 1, 0 }
  0x2c   : > { %s1225_s26 = sshll.u32 %s389_s4, 3  ;;  %s1313_s6 = sshll.u32 %s1884_s18, 3 }
  0x2d   : > { %2382 = sst [smem:[#allocation30_spill]] %s2381_s29  ;;  %s391_s22 = scalar_lea.vmem [#allocation7], %s1225_s26 }
  0x2e   : > { %s2383_s1 = sld [smem:[#allocation36_spill]]  ;;  %s399_s30 = sshll.u32 %s391_s22, 4  ;;  %s400_s30 = int_to_ptr.vmem [resolvable:$true] %s399_s30 }
  0x2f   : > { %p2067_p12 = pnand %p2351_p9, %p90_p11  ;;  %s2385_s2 = sld [smem:[#allocation37_spill]] }
  0x30   : > { %s2074_s29 = scalar_lea.sflag [#allocation8], %s387_s23  ;;  %s2386_s9 = smov 4  }
  0x31   : > { %s2387_s15 = smov 64   ;;  %s413_s22 = scalar_lea.vmem [#allocation9], %s1225_s26 }
  0x32   : > { %s2388_s5 = sld [smem:[#allocation40_spill]]  ;;  %s1894_s23 = smov [#allocation12]  }
  0x33   : > { %s2389_s7 = sld [smem:[#allocation42_spill]]  ;;  %s1215_s25 = sadd.s32 4294967294, %s1888_s19  }
  0x34   : > { %s396_s8 = scalar_lea.hbm %s2383_s1, %s1313_s6  ;;  %p62_p0 = scmp.ne.s32.totalorder %s1868_s14, %s1864_s13 }
  0x35   : > { %s397_s21 = sshll.u32 %s396_s8, 4  ;;  %s418_s4 = scalar_lea.hbm %s2385_s2, %s1313_s6  ;;  %s398_s21 = int_to_ptr.hbm [resolvable:$true] %s397_s21 }
  0x36   : > { %s419_s16 = sshll.u32 %s418_s4, 4  ;;  %s2084_s8 = sshll.u32 %s413_s22, 4  ;;  %s2082_s16 = int_to_ptr.hbm [resolvable:$true] %s419_s16  ;;  %s422_s8 = int_to_ptr.vmem [resolvable:$true] %s2084_s8 }
  0x37   : > { %1372 = dma.hbm_to_vmem [thread:$0]  (!%p2067_p12), %s398_s21, 128, %s400_s30, %s2074_s29, %s2387_s15, %s2387_s15, %s2386_s9  }
  0x38   : > { %s322_s6 = sshll.u32 %s2388_s5, 4  ;;  %s324_s4 = sshll.u32 %s1894_s23, 4  ;;  %s323_s6 = int_to_ptr.hbm [resolvable:$true] %s322_s6  ;;  %s325_s4 = int_to_ptr.vmem [resolvable:$true] %s324_s4 }
  0x39   : > { %s350_s26 = sshll.u32 %s2389_s7, 4  ;;  %s1895_s22 = smov [#allocation15]   ;;  %s351_s26 = int_to_ptr.hbm [resolvable:$true] %s350_s26 }
  0x3a   : > { %1359 = dma.hbm_to_vmem [thread:$0]  (!%p2027_p5), %s323_s6, 256, %s325_s4, [#allocation11], %s2387_s15, %s2387_s15, %s2386_s9  }
  0x3b   : > { %s352_s3 = sshll.u32 %s1895_s22, 4  ;;  %s43_s23 = sadd.s32 1, %s1880_s17  ;;  %s353_s3 = int_to_ptr.vmem [resolvable:$true] %s352_s3 }
  0x3c   : > { %1365 = dma.hbm_to_vmem [thread:$0]  (!%p2027_p5), %s351_s26, 256, %s353_s3, [#allocation14], %s2387_s15, %s2387_s15, %s2386_s9  }
  0x3d   : > { %p44_p13 = scmp.ge.s32.totalorder %s43_s23, 2  ;;  %s46_s21 = sadd.s32 1, %s1884_s18 }
  0x3e   : > { %s55_s30 = sadd.s32 1, %s1868_s14  ;;  %p2115_p2 = por %p63_p6, %p62_p0 }
  0x3f   : > { %s2428_s23 = smov (%p44_p13, %s43_s23), 0  ;;  %s2430_s21 = smov (!%p44_p13, %s46_s21), %s1884_s18 }
  0x40   : > { %2390 = sst [smem:[#allocation31_spill]] %s2428_s23  ;;  %s51_s27 = ssub.s32 %s1880_s17, %s2428_s23 }
  0x41   : > { %p48_p4 = scmp.ge.s32.totalorder %s2430_s21, 2  ;;  %p68_p5 = scmp.ne.s32.totalorder %s1864_s13, %s1860_s12 }
  0x42   : > { %p256_p7 = scmp.eq.s32.totalorder %s2011_s20, 3  ;;  %p262_p8 = scmp.eq.s32.totalorder %s1215_s25, 3 }
  0x43   : > { %s2432_s21 = smov (%p48_p4, %s2430_s21), 0  ;;  %p2126_p11 = por %p69_p1, %p68_p5 }
  0x44   : > { %2392 = sst [smem:[#allocation32_spill]] %s2432_s21  ;;  %p2130_p13 = por %p256_p7, %p62_p0 }
  0x45   : > { %s50_s22 = ssub.s32 %s1884_s18, %s2432_s21  ;;  %p2136_p6 = por %p262_p8, %p68_p5 }
  0x46   : > { %s2394_s26 = scalar_select %p2130_p13, 1, 0 }
  0x47   : > { %s2396_s3 = scalar_select %p2136_p6, 1, 0 }
  0x48   : > { %2395 = sst [smem:[#allocation33_spill]] %s2394_s26  ;;  %s52_s25 = sor.u32 %s51_s27, %s50_s22 }
  0x49   : > { %2397 = sst [smem:[#allocation34_spill]] %s2396_s3  ;;  %p79_p4 = scmp.eq.s32.totalorder %s50_s22, 0 }
  0x4a   : > { %p53_p9 = scmp.eq.s32.totalorder %s52_s25, 0  ;;  %s366_s1 = sand.u32 1, %s1868_s14  }
  0x4b   : > { %s2398_s2 = sadd.s32 1, %s1856_s11  ;;  %s1222_s21 = sshll.u32 %s366_s1, 2 }
  0x4c   : > { %s2144_s5 = scalar_select %p79_p4, %s1856_s11, %s2398_s2  }
  0x4d   : > { %s2147_s7 = scalar_select %p53_p9, %s1868_s14, %s55_s30  }
  0x4e   : > { %s1223_s23 = sshll.u32 %s1884_s18, 1  ;;  %s370_s26 = scalar_lea.vmem [#allocation4], %s1222_s21 }
  0x4f   : > { %s374_s12 = sadd.s32 %s1880_s17, %s1223_s23  ;;  %s380_s10 = sshll.u32 %s370_s26, 4  ;;  %s381_s10 = int_to_ptr.vmem [resolvable:$true] %s380_s10 }
  0x50   : > { %s1224_s20 = sshll.u32 %s374_s12, 2  ;;  %s2399_s0 = sld [smem:[#allocation35_spill]] }
  0x51   : > { %p2400_p0 = scmp.lt.s32.totalorder %s1888_s19, 4  ;;  %s367_s25 = scalar_lea.sflag [#allocation5], %s366_s1 }
  0x52   : > { %1375 = dma.hbm_to_vmem [thread:$0]  (!%p2067_p12), %s2082_s16, 128, %s422_s8, %s2074_s29, %s2387_s15, %s2387_s15, %s2386_s9  }
  0x53   : > { %p1367_p5 = pnand %p2400_p0, %p2115_p2  ;;  %s2169_s12 = sand.u32 (!%p2019_p3), 1, %s1864_s13  }
  0x54   : > { %439 = sbr.rel (%p2019_p3) target bundleno = 1338 (0x53a), region = 52  ;;  %s442_s23 = scalar_lea.sflag (!%p2019_p3), [#allocation5], %s2169_s12 }
  0x56   : > { %s376_s22 = scalar_lea.hbm %s2399_s0, %s1224_s20  ;;  %s1232_s20 = sshll.u32 (!%p2019_p3), %s2169_s12, 2 }
  0x57   : > { %s378_s2 = sshll.u32 %s376_s22, 4  ;;  %s2173_s21 = scalar_lea.vmem (!%p2019_p3), [#allocation4], %s1232_s20  ;;  %s379_s2 = int_to_ptr.hbm [resolvable:$true] %s378_s2 }
  0x58   : > { %1369 = dma.hbm_to_vmem [thread:$0]  (!%p1367_p5), %s379_s2, 64, %s381_s10, %s367_s25  }
  0x59   : > { %1823 = dma.done.wait (%p2126_p11), %s442_s23, 64  }
  0x5a   : > { %1825 = vsyncadd (%p2126_p11), %s442_s23, 4294967232  ;;  %s2401_s1 = sld [smem:[#allocation29_spill]] }
  0x5b   : > { %s2402_s10 = sld [smem:[#allocation25_spill]] }
  0x60   : > { %s451_s24 = sand.u32 1, %s2401_s1  }
  0x61   : > { %s453_s28 = sand.u32 1, %s2402_s10   ;;  %s452_s9 = scalar_lea.sflag [#allocation8], %s451_s24 }
  0x62   : > { %s1233_s29 = sshll.u32 %s453_s28, 3 }
  0x63   : > { %s455_s15 = scalar_lea.vmem [#allocation7], %s1233_s29 }
  0x64   : > { %1827 = dma.done.wait (%p2053_p10), %s452_s9, 256  }
  0x65   : > { %1829 = vsyncadd (%p2053_p10), %s452_s9, 4294967040  ;;  %s465_s8 = scalar_lea.vmem [#allocation9], %s1233_s29 }
  0x66   : > { %1831 = dma.done.wait (%p69_p1), [#allocation11], 512  }
  0x67   : > { %1833 = vsyncadd (%p69_p1), [#allocation11], 4294966784 }
  0x68   : > { %1835 = dma.done.wait (%p69_p1), [#allocation14], 512  }
  0x69   : > { %1837 = vsyncadd (%p69_p1), [#allocation14], 4294966784  ;;  %s2404_s30 = sld [smem:[#allocation28_spill]]  ;;  %s1239_s6 = sshll.u32 %s2169_s12, 3 }
  0x6a   : > { %s1240_s4 = sshll.u32 %s2169_s12, 5  ;;  %s2405_s27 = sld [smem:[#allocation38_spill]] }
  0x6b   : > { %s2203_s2 = scalar_lea.vmem [#allocation16], %s1239_s6  ;;  %s2205_s25 = scalar_lea.vmem [#allocation17], %s1240_s4 }
  0x6c   : > { %s2406_s20 = sld [smem:[#allocation27_spill]] }
  0x6f   : > { %p539_p3 = scmp.lt.s32.totalorder %s2404_s30, 1 }
  0x71   : > { %s2434_s30 = smov (!%p539_p3, %s2404_s30), 1 }
  0x72   : > { %s541_s22 = scalar_lea.vmem %s2405_s27, %s2434_s30  ;;  %p1241_p1 = scmp.ne.s32.totalorder %s2406_s20, 0 }
  0x74   : > { %546 = sbr.rel (%p1241_p1) target bundleno = 267 (0x10b), region = 84 }
  0x79   : > { %v1317_v0 = vld [vmem:[#allocation12 + $0x8] sm:$0xff]  ;;  %v1320_v1 = vld [vmem:[#allocation13 + $0x8] sm:$0xff]  ;;  %v1316_v2 = vld [vmem:[#allocation12] sm:$0xff]  ;;  %vm570_vm0 = vcmask 261120   ;;  %vm590_vm1 = vcmask 257024  }
  0x7a   : > { %580 = vmatpush.bf16.msra.mxu0 %v1317_v0  ;;  %625 = vmatpush.bf16.msra.mxu1 %v1320_v1  ;;  %v1319_v3 = vld [vmem:[#allocation13] sm:$0xff]  ;;  %v1318_v5 = vld [vmem:[%s465_s8] sm:$0xff] }
  0x7b   : > { %v1315_v4 = vld [vmem:[%s455_s15] sm:$0xff] }
  0x7e   : > { %581 = vmatpush.bf16.msra.mxu0 %v1316_v2  ;;  %626 = vmatpush.bf16.msra.mxu1 %v1319_v3 }
  0x81   : > { %1254 = vmatmul.msk.bf16.vlgmr.msra.gmra.mxu0 %vm570_vm0, %v1315_v4  ;;  %1267 = vmatmul.msk.bf16.vlgmr.msra.gmra.mxu1 %vm570_vm0, %v1318_v5 }
  0xfe   : > { %v583_v6 = vpop.f32.mrf.mxu0  ;;  %v628_v7 = vpop.f32.mrf.mxu1 }
  0xff   : > { %v588_v8 = vpack.c.bf16 %v583_v6, %v583_v6  ;;  %v633_v9 = vpack.c.bf16 %v628_v7, %v628_v7 }
 0x101   : > { %591 = vst.msk [vmem:[#allocation2] sm:$0xf] %vm590_vm1, %v588_v8 }
 0x102   : > { %635 = vst.msk [vmem:[#allocation3] sm:$0xf] %vm590_vm1, %v633_v9 }
 0x106   : > { %v585_v10 = vpop.f32.mrf.mxu0  ;;  %v630_v11 = vpop.f32.mrf.mxu1 }
 0x107   : > { %v589_v12 = vpack.c.bf16 %v585_v10, %v585_v10  ;;  %v634_v13 = vpack.c.bf16 %v630_v11, %v630_v11 }
 0x109   : > { %592 = vst.msk [vmem:[#allocation2 + $0x4] sm:$0xf] %vm590_vm1, %v589_v12 }
 0x10a   : > { %636 = vst.msk [vmem:[#allocation3 + $0x4] sm:$0xf] %vm590_vm1, %v634_v13 }
 0x10b PF: > { %v1322_v14 = vld [vmem:[#allocation10 + $0x8] sm:$0xff]  ;;  %vm688_vm2 = vcmask 64512   ;;  %v1321_v16 = vld [vmem:[#allocation10] sm:$0xff]  ;;  %s1896_s23 = smov 112   ;;  %s1897_s1 = smov 104   ;;  %vm654_vm3 = vcmask 261120  }
 0x10c   : > { %664 = vmatpush.bf16.msra.mxu0 %v1322_v14  ;;  %s1898_s10 = smov 120   ;;  %v637_v18 = vld [vmem:[%s2173_s21] sm:$0xf]  ;;  %v676_v30 = vld [vmem:[%s541_s22] sm:$0x1]  ;;  %v1899_v32 = vmov 0.0  }
 0x10d   : > { %vm677_vm4 = vcmp.eq.f32.partialorder %v676_v30, 0.0  ;;  %vm708_vm5 = vcmask 130048   ;;  %s1900_s28 = smov 8   ;;  %s1901_s29 = smov 16   ;;  %vm927_vm6 = vcmask 195584  }
 0x10e   : > { %v678_v33 = vsel %vm677_vm4, -1e+09, %v1899_v32  ;;  %s1902_s9 = smov 24   ;;  %s2408_s15 = sld [smem:[#allocation28_spill]] }
 0x10f   : > { %v681_v34 = vperm.slane %v678_v33, 0  ;;  %s2409_s8 = sld [smem:[#allocation27_spill]] }
 0x110   : > { %v1323_v15 = vld [vmem:[#allocation2] sm:$0xff]  ;;  %665 = vmatpush.bf16.msra.mxu0 %v1321_v16  ;;  %s2411_s22 = sld [smem:[#allocation44_spill]] }
 0x111   : > { %803 = vrot.lane.b32.xlu2 %v1323_v15, %s1896_s23  ;;  %859 = vrot.lane.b32.xlu1 %v1323_v15, %s1897_s1  ;;  %v693_v17 = vsel %vm688_vm2, %v1323_v15, 0  ;;  %v1324_v57 = vld [vmem:[#allocation3] sm:$0xff] }
 0x112   : > { %747 = vrot.lane.b32.xlu0 %v1323_v15, %s1898_s10  ;;  %702 = vmatpush.bf16.xpose.msra.mxu1 %v693_v17 }
 0x113   : > { %1276 = vmatmul.msk.bf16.vlgmr.msra.gmra.mxu0 %vm654_vm3, %v637_v18  ;;  %738 = vmatpush.bf16.msra.mxu2 %v1324_v57 }
 0x114   : > { %s1309_s6 = sshll.u32 %s2408_s15, 3 }
 0x115   : > { %s995_s4 = sadd.s32 %s2409_s8, %s1309_s6 }
 0x116   : > { %s1310_s26 = sshll.u32 %s995_s4, 3 }
 0x117   : > { %s997_s20 = scalar_lea.hbm %s2411_s22, %s1310_s26 }
 0x16b   : > { %v804_v19 = vpop.permute.xlu2 %803 }
 0x16c   : > { %v809_v20 = vsel %vm688_vm2, %v804_v19, 0 }
 0x16d   : > { %818 = vmatpush.bf16.xpose.msrb.mxu0 %v809_v20 }
 0x183   : > { %v860_v27 = vpop.permute.xlu1 %859 }
 0x184   : > { %v748_v25 = vpop.permute.xlu0 %747  ;;  %v865_v28 = vsel %vm688_vm2, %v860_v27, 0 }
 0x185   : > { %v753_v26 = vsel %vm688_vm2, %v748_v25, 0 }
 0x186   : > { %762 = vmatpush.bf16.xpose.msra.mxu3 %v753_v26 }
 0x18e   : > { %874 = vmatpush.bf16.xpose.msrb.mxu3 %v865_v28 }
 0x190   : > { %v667_v21 = vpop.f32.mrf.mxu0 }
 0x191   : > { %v671_v22 = vmul.f32 0.35355338, %v667_v21 }
 0x193   : > { %v679_v23 = vpack.c.bf16 %v671_v22, %v671_v22 }
 0x195   : > { %801 = vrot.lane.b32.xlu2 %v679_v23, %s1896_s23  ;;  %857 = vrot.lane.b32.xlu1 %v679_v23, %s1897_s1 }
 0x196   : > { %745 = vrot.lane.b32.xlu0 %v679_v23, %s1898_s10  ;;  %1281 = vmatmul.msk.bf16.vlgmr.msra.gmra.mxu1 %vm688_vm2, %v679_v23 }
 0x198   : > { %v669_v24 = vpop.f32.mrf.mxu0 }
 0x1ef   : > { %v802_v29 = vpop.permute.xlu2 %801 }
 0x1f0   : > { %1290 = vmatmul.msk.bf16.vlgmr.msrb.gmra.mxu0 %vm688_vm2, %v802_v29 }
 0x207   : > { %v858_v38 = vpop.permute.xlu1 %857 }
 0x208   : > { %v746_v31 = vpop.permute.xlu0 %745 }
 0x209   : > { %1287 = vmatmul.msk.bf16.vlgmr.msra.gmra.mxu3 %vm688_vm2, %v746_v31 }
 0x213   : > { %v704_v35 = vpop.f32.mrf.mxu1 }
 0x214   : > { %v705_v36 = vadd.f32 %v704_v35, %v681_v34 }
 0x216   : > { %v709_v37 = vsel %vm708_vm5, %v705_v36, -inf }
 0x217   : > { %710 = vmax.xlane.f32.xlu0 %v709_v37  ;;  %v1325_v37 = vld [vmem:[#allocation15] sm:$0xff] }
 0x219   : > { %1293 = vmatmul.msk.bf16.vlgmr.msrb.gmra.mxu3 %vm688_vm2, %v858_v38 }
 0x21b   : > { %v706_v39 = vpop.f32.mrf.mxu1 }
 0x26d   : > { %v820_v40 = vpop.f32.mrf.mxu0 }
 0x26e   : > { %v821_v54 = vadd.f32 %v820_v40, %v681_v34 }
 0x270   : > { %v824_v56 = vsel %vm708_vm5, %v821_v54, -inf }
 0x275   : > { %v822_v41 = vpop.f32.mrf.mxu0 }
 0x28a   : > { %v711_v42 = vpop.xlane.xlu0 %710 }
 0x28b   : > { %v712_v43 = vsub.f32 %v705_v36, %v711_v42  ;;  %v1326_v36 = vld [vmem:[#allocation15 + $0x8] sm:$0xff] }
 0x28c   : > { %v764_v44 = vpop.f32.mrf.mxu3  ;;  %955 = vmatpush.bf16.msra.mxu0 %v1326_v36 }
 0x28d   : > { %v713_v45 = vmul.f32 1.442695, %v712_v43  ;;  %v765_v46 = vadd.f32 %v764_v44, %v681_v34 }
 0x28f   : > { %1496 = vpow2.f32 %v713_v45  ;;  %v768_v47 = vsel %vm708_vm5, %v765_v46, -inf }
 0x290   : > { %769 = vmax.xlane.f32.xlu1 %v768_v47  ;;  %956 = vmatpush.bf16.msra.mxu0 %v1325_v37 }
 0x294   : > { %v766_v48 = vpop.f32.mrf.mxu3 }
 0x295   : > { %v1497_v49 = vpop.eup %1496 }
 0x296   : > { %v715_v50 = vsel %vm708_vm5, %v1497_v49, 0.0 }
 0x297   : > { %716 = vadd.xlane.f32.xlu0 %v715_v50 }
 0x29c   : > { %v876_v51 = vpop.f32.mrf.mxu3 }
 0x29d   : > { %v877_v52 = vadd.f32 %v876_v51, %v681_v34 }
 0x29f   : > { %v880_v53 = vsel %vm708_vm5, %v877_v52, -inf }
 0x2a0   : > { %881 = vmax.xlane.f32.xlu2 %v880_v53 }
 0x2a4   : > { %v878_v55 = vpop.f32.mrf.mxu3 }
 0x2a8   : > { %825 = vmax.xlane.f32.xlu2 %v824_v56 }
 0x2c0   : > { %782 = vrot.lane.b32.xlu2 %v1324_v57, %s1898_s10  ;;  %s969_s10 = scalar_lea.sflag [#allocation18], %s2169_s12 }
 0x303   : > { %v770_v1 = vpop.xlane.xlu1 %769 }
 0x304   : > { %v771_v5 = vsub.f32 %v765_v46, %v770_v1 }
 0x306   : > { %v772_v8 = vmul.f32 1.442695, %v771_v5 }
 0x30a   : > { %v717_v58 = vpop.xlane.xlu0 %716 }
 0x30b   : > { %1498 = vrcp.f32 %v717_v58 }
 0x311   : > { %v1499_v59 = vpop.eup %1498 }
 0x312   : > { %v719_v60 = vmul.f32 %v1499_v59, %v1497_v49 }
 0x313   : > { %v882_v61 = vpop.xlane.xlu2 %881 }
 0x314   : > { %v883_v62 = vsub.f32 %v877_v52, %v882_v61  ;;  %720 = vst.msk [vmem:[%s2205_s25] sm:$0xff] %vm708_vm5, %v719_v60  ;;  %v721_v63 = vpack.c.bf16 %v719_v60, %v719_v60 }
 0x316   : > { %v884_v0 = vmul.f32 1.442695, %v883_v62  ;;  %1286 = vmatmul.msk.bf16.vlgmr.msra.gmra.mxu2 %vm708_vm5, %v721_v63 }
 0x318   : > { %1500 = vpow2.f32 %v884_v0 }
 0x31b   : > { %v826_v2 = vpop.xlane.xlu2 %825 }
 0x31c   : > { %v827_v3 = vsub.f32 %v821_v54, %v826_v2 }
 0x31e   : > { %v1501_v4 = vpop.eup %1500  ;;  %v828_v6 = vmul.f32 1.442695, %v827_v3 }
 0x31f   : > { %v886_v7 = vsel %vm708_vm5, %v1501_v4, 0.0 }
 0x320   : > { %1502 = vpow2.f32 %v828_v6  ;;  %887 = vadd.xlane.f32.xlu0 %v886_v7 }
 0x321   : > { %1504 = vpow2.f32 %v772_v8 }
 0x323   : > { %v783_v13 = vpop.permute.xlu2 %782 }
 0x324   : > { %795 = vmatpush.bf16.msrb.mxu2 %v783_v13 }
 0x326   : > { %v1503_v9 = vpop.eup %1502 }
 0x327   : > { %v830_v10 = vsel %vm708_vm5, %v1503_v9, 0.0  ;;  %v1505_v11 = vpop.eup %1504 }
 0x328   : > { %831 = vadd.xlane.f32.xlu1 %v830_v10  ;;  %v774_v12 = vsel %vm708_vm5, %v1505_v11, 0.0 }
 0x330   : > { %775 = vadd.xlane.f32.xlu1 %v774_v12 }
 0x334   : > { %894 = vrot.lane.b32.xlu0 %v1324_v57, %s1897_s1  ;;  %s1000_s1 = sshll.u32 %s997_s20, 4  ;;  %s1001_s1 = int_to_ptr.hbm [resolvable:$true] %s1000_s1 }
 0x335   : > { %s1736_s21 = sshra.s32 %s1001_s1, 4  ;;  %s1737_s21 = int_to_ptr.hbm [resolvable:$true] %s1736_s21 }
 0x336   : > { %s1738_s16 = scalar_lea.hbm %s1737_s21, 32  ;;  %p1743_p2 = scmp.lt.s32.totalorder %s1737_s21, %s2411_s22 }
 0x337   : > { %p1739_p9 = scmp.ne.s32.totalorder %s1737_s21, %s1738_s16 }
 0x339   : > { %p1740_p10 = pnand %p1739_p9, %p2130_p13 }
 0x33b   : > { %p1741_p12 = pneg %p1740_p10 }
 0x349   : > { %838 = vrot.lane.b32.xlu1 %v1324_v57, %s1896_s23  ;;  %s998_s23 = sshll.u32 %s2205_s25, 4  ;;  %s999_s23 = int_to_ptr.vmem [resolvable:$true] %s998_s23 }
 0x393   : > { %v888_v14 = vpop.xlane.xlu0 %887 }
 0x394   : > { %1506 = vrcp.f32 %v888_v14 }
 0x399   : > { %v740_v15 = vpop.f32.mrf.mxu2 }
 0x39a   : > { %v1507_v16 = vpop.eup %1506 }
 0x39b   : > { %v890_v17 = vmul.f32 %v1507_v16, %v1501_v4  ;;  %v832_v18 = vpop.xlane.xlu1 %831 }
 0x39c   : > { %1508 = vrcp.f32 %v832_v18 }
 0x39d   : > { %1294 = vst.msk [vmem:[%s2205_s25 + $0x18] sm:$0xff] %vm708_vm5, %v890_v17  ;;  %v893_v28 = vpack.c.bf16 %v890_v17, %v890_v17 }
 0x3a1   : > { %v742_v19 = vpop.f32.mrf.mxu2 }
 0x3a2   : > { %v1509_v20 = vpop.eup %1508 }
 0x3a3   : > { %v834_v21 = vmul.f32 %v1509_v20, %v1503_v9  ;;  %v776_v22 = vpop.xlane.xlu1 %775 }
 0x3a4   : > { %1510 = vrcp.f32 %v776_v22 }
 0x3a5   : > { %1291 = vst.msk [vmem:[%s2205_s25 + $0x10] sm:$0xff] %vm708_vm5, %v834_v21  ;;  %v837_v29 = vpack.c.bf16 %v834_v21, %v834_v21 }
 0x3a6   : > { %v895_v23 = vpop.permute.xlu0 %894 }
 0x3a7   : > { %907 = vmatpush.bf16.msra.mxu2 %v895_v23 }
 0x3aa   : > { %v1511_v24 = vpop.eup %1510 }
 0x3ab   : > { %v778_v25 = vmul.f32 %v1511_v24, %v1505_v11 }
 0x3ad   : > { %1288 = vst.msk [vmem:[%s2205_s25 + $0x8] sm:$0xff] %vm708_vm5, %v778_v25  ;;  %v781_v26 = vpack.c.bf16 %v778_v25, %v778_v25 }
 0x3af   : > { %1289 = vmatmul.msk.bf16.vlgmr.msrb.gmra.mxu2 %vm708_vm5, %v781_v26 }
 0x3bb   : > { %v839_v27 = vpop.permute.xlu1 %838 }
 0x3bc   : > { %851 = vmatpush.bf16.msrb.mxu1 %v839_v27 }
 0x3bf   : > { %1292 = vmatmul.msk.bf16.vlgmr.msrb.gmra.mxu1 %vm708_vm5, %v837_v29  ;;  %1295 = vmatmul.msk.bf16.vlgmr.msra.gmra.mxu2 %vm708_vm5, %v893_v28 }
 0x432   : > { %v797_v30 = vpop.f32.mrf.mxu2 }
 0x433   : > { %914 = vrot.lane.b32.xlu2 %v797_v30, %s1900_s28 }
 0x43a   : > { %v799_v31 = vpop.f32.mrf.mxu2 }
 0x43c   : > { %v853_v32 = vpop.f32.mrf.mxu1 }
 0x43d   : > { %918 = vrot.lane.b32.xlu0 %v853_v32, %s1901_s29 }
 0x442   : > { %v909_v33 = vpop.f32.mrf.mxu2 }
 0x443   : > { %922 = vrot.lane.b32.xlu2 %v909_v33, %s1902_s9  ;;  %s1742_s9 = scalar_lea.hbm %s2411_s22, 128 }
 0x444   : > { %v855_v34 = vpop.f32.mrf.mxu1  ;;  %p1744_p7 = scmp.lt.s32.totalorder %s1742_s9, %s1738_s16 }
 0x446   : > { %p1745_p8 = por %p1744_p7, %p1743_p2 }
 0x448   : > { %p1746_p11 = pnand %p1745_p8, %p1741_p12 }
 0x44a   : > { %v911_v35 = vpop.f32.mrf.mxu2 }
 0x48d   : > { %v915_v38 = vpop.permute.xlu2 %914 }
 0x48e   : > { %v925_v39 = vsel %vm688_vm2, %v740_v15, %v915_v38 }
 0x49d   : > { %v923_v41 = vpop.permute.xlu2 %922 }
 0x4af   : > { %v919_v40 = vpop.permute.xlu0 %918 }
 0x4b0   : > { %v926_v42 = vsel %vm708_vm5, %v925_v39, %v919_v40 }
 0x4b1   : > { %v928_v43 = vsel %vm927_vm6, %v926_v42, %v923_v41 }
 0x4b2   : > { %v929_v44 = vpack.c.bf16 %v928_v43, %v928_v43 }
 0x4b4   : > { %1304 = vmatmul.msk.bf16.vlgmr.msra.gmra.mxu0 %vm654_vm3, %v929_v44 }
 0x4b5   : > { %1749 = shalt.err (!%p1746_p11)
}
 0x4b6   : > { %s1903_s25 = smov 128   ;;  %s1904_s26 = smov 256  }
 0x4b7   : > { %1350 = dma.vmem_to_hbm [thread:$0]  (%p2130_p13), %s999_s23, 512, %s1001_s1, %s969_s10, %s1903_s25, %s1904_s26, %s1900_s28  }
 0x4b8   : > { %s1307_s3 = sshll.u32 %s2408_s15, 1  ;;  %s2412_s24 = sld [smem:[#allocation43_spill]] }
 0x4b9   : > { %s979_s27 = sadd.s32 %s2409_s8, %s1307_s3  ;;  %s983_s9 = sshll.u32 %s2203_s2, 4  ;;  %s984_s9 = int_to_ptr.vmem [resolvable:$true] %s983_s9 }
 0x4ba   : > { %s1308_s20 = sshll.u32 %s979_s27, 3  ;;  %s964_s4 = scalar_lea.sflag [#allocation6], %s2169_s12 }
 0x4be   : > { %s981_s29 = scalar_lea.hbm %s2412_s24, %s1308_s20  ;;  %s1770_s8 = scalar_lea.hbm %s2412_s24, 32 }
 0x4bf   : > { %s985_s6 = sshll.u32 %s981_s29, 4  ;;  %s986_s6 = int_to_ptr.hbm [resolvable:$true] %s985_s6 }
 0x4c0   : > { %s1764_s0 = sshra.s32 %s986_s6, 4  ;;  %s1765_s0 = int_to_ptr.hbm [resolvable:$true] %s1764_s0 }
 0x4c1   : > { %s1766_s22 = scalar_lea.hbm %s1765_s0, 8  ;;  %p1771_p3 = scmp.lt.s32.totalorder %s1765_s0, %s2412_s24 }
 0x4c2   : > { %p1767_p4 = scmp.ne.s32.totalorder %s1765_s0, %s1766_s22  ;;  %p1772_p1 = scmp.lt.s32.totalorder %s1770_s8, %s1766_s22 }
 0x4c4   : > { %p1768_p0 = pnand %p1767_p4, %p2130_p13  ;;  %p1773_p9 = por %p1772_p1, %p1771_p3 }
 0x4c6   : > { %p1769_p5 = pneg %p1768_p0 }
 0x4c8   : > { %p1774_p10 = pnand %p1773_p9, %p1769_p5 }
 0x531   : > { %v958_v45 = vpop.f32.mrf.mxu0 }
 0x532   : > { %962 = vst.msk [vmem:[%s2203_s2] sm:$0xff] %vm654_vm3, %v958_v45 }
 0x533   : > { %1777 = shalt.err (!%p1774_p10)
}
 0x534   : > { %1349 = dma.vmem_to_hbm [thread:$0]  (%p2130_p13), %s984_s9, 128, %s986_s6, %s964_s4  }
 0x539   : > { %v960_v46 = vpop.f32.mrf.mxu0 }
 0x53a PF: > { %s2413_s12 = sld [smem:[#allocation26_spill]]  ;;  %p1392_p12 = scmp.ge.s32.totalorder %s1888_s19, 2 }
 0x53c   : > { %p1377_p2 = pnand %p1392_p12, %p2136_p6 }
 0x53e   : > { %p1378_p7 = pneg %p1377_p2 }
 0x540   : > { %s1015_s10 = sand.u32 1, %s2413_s12  }
 0x541   : > { %s1016_s25 = scalar_lea.sflag [#allocation6], %s1015_s10 }
 0x542   : > { %1839 = dma.done.wait (%p1378_p7), %s1016_s25, 128  }
 0x543   : > { %1841 = vsyncadd (%p1378_p7), %s1016_s25, 4294967168  ;;  %s1026_s0 = scalar_lea.sflag [#allocation18], %s1015_s10 }
 0x544   : > { %1843 = dma.done.wait (%p1378_p7), %s1026_s0, 512  }
 0x545   : > { %1845 = vsyncadd (%p1378_p7), %s1026_s0, 4294966784  ;;  %s34_s19 = sadd.s32 1, %s1888_s19   ;;  %s2415_s30 = sld [smem:[#allocation25_spill]] }
 0x546   : > { %p31_p8 = scmp.ge.s32.totalorder %s34_s19, 6   ;;  %s2416_s22 = sld [smem:[#allocation31_spill]] }
 0x547   : > { %s2417_s26 = sld [smem:[#allocation32_spill]]  ;;  %s2418_s10 = smov %s1856_s11 }
 0x548   : > { %s2419_s11 = smov %s2144_s5  ;;  %s2420_s12 = smov %s1864_s13 }
 0x549   : > { %s2421_s13 = smov %s1868_s14  ;;  %s2422_s14 = smov %s2147_s7 }
 0x54a   : > { %s2423_s15 = smov %s1880_s17  ;;  %s2424_s16 = smov %s1884_s18 }
 0x54b   :  { %33 = sbr.rel (!%p31_p8) target bundleno = 26 (0x1a), region = 164 }
 0x54c   : > { %s2425_s17 = smov %s2416_s22 }
 0x54d   : > { %s2426_s18 = smov %s2417_s26 }
 0x550   :  { %1032 = vsyncpa [#allocation5], 1 }
 0x551   :  { %1034 = vsyncpa [#allocation5 + $0x1], 1 }
 0x552   :  { %1035 = vsyncpa [#allocation8], 1 }
 0x553   :  { %1037 = vsyncpa [#allocation8 + $0x1], 1 }
 0x554   :  { %1038 = vsyncpa [#allocation11], 1 }
 0x555   :  { %1039 = vsyncpa [#allocation14], 1 }
 0x556   :  { %1040 = vsyncpa [#allocation6], 1 }
 0x557   :  { %1042 = vsyncpa [#allocation6 + $0x1], 1 }
 0x558   :  { %1043 = vsyncpa [#allocation18], 1 }
 0x559   :  { %1045 = vsyncpa [#allocation18 + $0x1], 1 }

</bundles_post_ra>
